<compile_context>
chip_gen: v7x
topology: tpu7x:2x2x1
jax: 0.10.0
libtpu: 0.0.40
codegen_flags: <defaults>
</compile_context>

<pallas_src>
import jax
import jax.numpy as jnp
from jax.experimental import pallas as pl
from jax.experimental.pallas import tpu as pltpu

LANES = 128
SUBLANES = 8
VREG_ELEMS = SUBLANES * LANES  # 1024


def _sublane_align(dtype):
    """Row-tile alignment so packed dtypes respect their sublane tiling."""
    itemsize = jnp.dtype(dtype).itemsize
    return SUBLANES * max(1, 4 // itemsize)  # f32 -> 8, bf16 -> 16, int8 -> 32


def _device_defaults():
    """(block_rows, num_splits, vmem_limit_bytes, multi_core) per generation."""
    kind = ""
    try:
        kind = jax.devices()[0].device_kind.lower()
    except Exception:
        pass
    multi_core = ("v7" in kind) or ("7x" in kind)
    if multi_core:
        # v7x: 2 TCs, 64 MiB VMEM/TC.  8192-row f32 blocks = 4 MiB/input,
        # 16 MiB double-buffered; keep headroom under a 48 MiB scoped limit.
        return 8192, 2, 48 * 1024 * 1024, True
    # v5e / v6e: 1 TC, 128 MiB physical VMEM.
    return 8192, 1, 64 * 1024 * 1024, False


def _make_dice_kernel(rows, tr, steps, needs_mask, chunk_rows):
    n_chunks = tr // chunk_rows
    groups = chunk_rows // SUBLANES
    unroll = True if n_chunks <= 8 else 8

    def _accum(p, t, inter_acc, sum_acc):
        # Collapse the chunk onto a single (8,128) vreg with plain VPU adds
        # (the reshape is a pure sublane-tiling reinterpretation).
        inter_acc = inter_acc + (p * t).reshape(groups, SUBLANES, LANES).sum(axis=0)
        sum_acc = sum_acc + (p + t).reshape(groups, SUBLANES, LANES).sum(axis=0)
        return inter_acc, sum_acc

    def kernel(p_ref, t_ref, inter_ref, sum_ref):
        c = pl.program_id(0)   # parallel split (both TCs on v7x)
        i = pl.program_id(1)   # reduction steps within the split

        @pl.when(i == 0)
        def _():
            inter_ref[...] = jnp.zeros_like(inter_ref)
            sum_ref[...] = jnp.zeros_like(sum_ref)

        row0 = (c * steps + i) * tr
        zero = jnp.zeros((SUBLANES, LANES), jnp.float32)

        def fast_body(j, carry):
            inter_acc, sum_acc = carry
            r = pl.multiple_of(j * chunk_rows, chunk_rows)
            p = p_ref[pl.ds(r, chunk_rows), :].astype(jnp.float32)
            t = t_ref[pl.ds(r, chunk_rows), :].astype(jnp.float32)
            return _accum(p, t, inter_acc, sum_acc)

        def fast_tile():
            ia, sa = jax.lax.fori_loop(0, n_chunks, fast_body, (zero, zero),
                                       unroll=unroll)
            inter_ref[...] += ia
            sum_ref[...] += sa

        if not needs_mask:
            fast_tile()
            return

        def masked_body(j, carry):
            inter_acc, sum_acc = carry
            r = pl.multiple_of(j * chunk_rows, chunk_rows)
            p = p_ref[pl.ds(r, chunk_rows), :].astype(jnp.float32)
            t = t_ref[pl.ds(r, chunk_rows), :].astype(jnp.float32)
            # Mask uses the UNclamped logical row index, so duplicated DMAs
            # of the clamped last block contribute exactly zero.
            rid = row0 + r + jax.lax.broadcasted_iota(jnp.int32, (chunk_rows, 1), 0)
            valid = rid < rows
            p = jnp.where(valid, p, 0.0)
            t = jnp.where(valid, t, 0.0)
            return _accum(p, t, inter_acc, sum_acc)

        is_interior = row0 + tr <= rows

        @pl.when(is_interior)
        def _():
            fast_tile()

        @pl.when(jnp.logical_not(is_interior))
        def _():
            ia, sa = jax.lax.fori_loop(0, n_chunks, masked_body, (zero, zero),
                                       unroll=unroll)
            inter_ref[...] += ia
            sum_ref[...] += sa

    return kernel


def dice_loss(prediction, target, eps=1e-07, block_rows=None, num_splits=None,
              vmem_limit_bytes=None):
    """Pallas TPU implementation of Dice_Loss.forward.

    prediction, target: arrays of identical shape (e.g. [B, C, d1, ..., dN]).
    Returns a scalar float32 loss.
    """
    assert prediction.shape == target.shape
    def_rows, def_splits, def_vmem, multi_core = _device_defaults()
    if block_rows is None:
        block_rows = def_rows
    if num_splits is None:
        num_splits = def_splits
    if vmem_limit_bytes is None:
        vmem_limit_bytes = def_vmem

    pflat = prediction.reshape(-1)
    tflat = target.reshape(-1)
    n = pflat.shape[0]

    # Aligned prefix goes through the kernel; the (<1024 element) tail is
    # folded into the plain-JAX finalize.  No copying pad pass.
    n_main = (n // VREG_ELEMS) * VREG_ELEMS

    if n_main == 0:
        # Sub-vreg input: nothing for a streaming kernel to win; plain JAX.
        pf = pflat.astype(jnp.float32)
        tf = tflat.astype(jnp.float32)
        inter = jnp.sum(pf * tf)
        denom = jnp.sum(pf) + jnp.sum(tf) + eps
        return (1.0 - (2.0 * inter + eps) / denom).astype(jnp.float32)

    if n_main == n:
        p_main, t_main = pflat, tflat
        tail_inter = tail_sum = None
    else:
        p_main = jax.lax.slice(pflat, (0,), (n_main,))
        t_main = jax.lax.slice(tflat, (0,), (n_main,))
        p_tail = jax.lax.slice(pflat, (n_main,), (n,)).astype(jnp.float32)
        t_tail = jax.lax.slice(tflat, (n_main,), (n,)).astype(jnp.float32)
        tail_inter = jnp.sum(p_tail * t_tail)
        tail_sum = jnp.sum(p_tail) + jnp.sum(t_tail)

    rows = n_main // LANES
    p2 = p_main.reshape(rows, LANES)
    t2 = t_main.reshape(rows, LANES)

    # Row tile: as big as comfortably fits double-buffered in scoped VMEM,
    # aligned to the dtype's sublane packing (and to the 128-row inner chunk
    # when possible so the chunked loop divides the tile exactly).
    align = max(_sublane_align(prediction.dtype), _sublane_align(target.dtype))
    tr = min(int(block_rows), rows)
    if tr < rows:
        q = LANES if tr >= LANES else align
        tr = max(align, (tr // q) * q)
        if tr > rows:
            tr = rows
    chunk_rows = LANES if (tr % LANES == 0) else tr

    total_blocks = -(-rows // tr)
    num_splits = max(1, min(int(num_splits), total_blocks))
    steps = -(-total_blocks // num_splits)
    needs_mask = (num_splits * steps * tr != rows)
    last_block = total_blocks - 1

    if needs_mask:
        def in_map(c, i):
            # Clamp so the DMA never targets a block past the array; the
            # in-kernel row mask zeroes duplicated / partial rows.
            return (jnp.minimum(c * steps + i, last_block), 0)
    else:
        def in_map(c, i):
            return (c * steps + i, 0)

    out_map = lambda c, i: (c, 0, 0)
    acc_shape = jax.ShapeDtypeStruct((num_splits, SUBLANES, LANES), jnp.float32)

    itemsize = (jnp.dtype(prediction.dtype).itemsize
                + jnp.dtype(target.dtype).itemsize)
    cost = pl.CostEstimate(flops=4 * n_main, transcendentals=0,
                           bytes_accessed=n_main * itemsize)

    kernel = _make_dice_kernel(rows, tr, steps, needs_mask, chunk_rows)

    def _call(dim_semantics):
        return pl.pallas_call(
            kernel,
            out_shape=(acc_shape, acc_shape),
            grid_spec=pltpu.PrefetchScalarGridSpec(
                num_scalar_prefetch=0,
                grid=(num_splits, steps),
                in_specs=[
                    pl.BlockSpec((tr, LANES), in_map),
                    pl.BlockSpec((tr, LANES), in_map),
                ],
                out_specs=[
                    pl.BlockSpec((None, SUBLANES, LANES), out_map),
                    pl.BlockSpec((None, SUBLANES, LANES), out_map),
                ],
            ),
            compiler_params=pltpu.CompilerParams(
                dimension_semantics=dim_semantics,
                vmem_limit_bytes=int(vmem_limit_bytes),
            ),
            cost_estimate=cost,
        )(p2, t2)

    if multi_core and num_splits >= 2:
        # On 2-TC chips (v7x) ask explicitly for a per-core split of the
        # leading axis; fall back to the generic hint if lowering rejects it.
        try:
            inter_out, sum_out = _call((pltpu.CORE_PARALLEL, pltpu.ARBITRARY))
        except Exception:
            inter_out, sum_out = _call(("parallel", "arbitrary"))
    else:
        inter_out, sum_out = _call(("parallel", "arbitrary"))

    # Tiny finalize in plain JAX: cross-lane reduce of 2*num_splits vregs.
    intersection = jnp.sum(inter_out)
    sums = jnp.sum(sum_out)
    if tail_inter is not None:
        intersection = intersection + tail_inter
        sums = sums + tail_sum
    return (1.0 - (2.0 * intersection + eps) / (sums + eps)).astype(jnp.float32)


def dice_loss_ref(prediction, target, eps=1e-07):
    pflat = prediction.reshape(-1).astype(jnp.float32)
    tflat = target.reshape(-1).astype(jnp.float32)
    inter = jnp.sum(pflat * tflat)
    return 1.0 - (2.0 * inter + eps) / (jnp.sum(pflat) + jnp.sum(tflat) + eps)


def _check(prediction, target, **kwargs):
    loss = dice_loss(prediction, target, **kwargs)
    jax.block_until_ready(loss)
    ref = dice_loss_ref(prediction, target)
    assert jnp.allclose(loss, ref, atol=1e-5, rtol=1e-5), (loss, ref, kwargs)


if __name__ == "__main__":
    key = jax.random.PRNGKey(0)
    kp, kt, kq, kr = jax.random.split(key, 4)

    # Primary test: NCHW one-hot segmentation setup, matches the PyTorch spec.
    B, C, H, W = 2, 4, 16, 16
    prediction = jax.nn.softmax(
        jax.random.normal(kp, (B, C, H, W), dtype=jnp.float32), axis=1
    )
    labels = jax.random.randint(kt, (B, H, W), 0, C)
    target = jax.nn.one_hot(labels, C, dtype=jnp.float32).transpose(0, 3, 1, 2)
    _check(prediction, target)

    # Multi-block accumulation path (small tile override).
    _check(prediction, target, block_rows=8)

    # Ragged grid: 40 rows, 16-row tiles -> partial boundary block handled by
    # the gated in-kernel row mask; also exercise the 2-way split + clamp.
    pred_c = jax.nn.sigmoid(jax.random.normal(kq, (2, 4, 5, 128), dtype=jnp.float32))
    targ_c = (jax.random.uniform(kr, (2, 4, 5, 128)) > 0.5).astype(jnp.float32)
    _check(pred_c, targ_c, block_rows=16)
    _check(pred_c, targ_c, block_rows=16, num_splits=2)

    # Unaligned element count -> aligned prefix through the kernel, tail
    # folded into the plain-JAX finalize (no padding pass).
    pred_d = jax.nn.sigmoid(jax.random.normal(kq, (3, 5, 7, 11), dtype=jnp.float32))
    targ_d = (jax.random.uniform(kr, (3, 5, 7, 11)) > 0.5).astype(jnp.float32)
    _check(pred_d, targ_d)

    # Sub-vreg input -> pure-JAX fallback path.
    pred_e = jax.nn.sigmoid(jax.random.normal(kq, (2, 3, 4, 5), dtype=jnp.float32))
    targ_e = (jax.random.uniform(kr, (2, 3, 4, 5)) > 0.5).astype(jnp.float32)
    _check(pred_e, targ_e)

    print("KERNEL_OK")
</pallas_src>

<mosaic_0001>
module attributes {stable_mosaic.version = 11 : i64} {
  func.func @kernel(%arg0: i32, %arg1: i32, %arg2: memref<16x128xf32, #tpu.memory_space<vmem>>, %arg3: memref<16x128xf32, #tpu.memory_space<vmem>>, %arg4: memref<1x8x128xf32, #tpu.memory_space<vmem>>, %arg5: memref<1x8x128xf32, #tpu.memory_space<vmem>>) attributes {dimension_semantics = [#tpu.dimension_semantics<parallel>, #tpu.dimension_semantics<arbitrary>], iteration_bounds = array<i64: 1, 1>, scalar_prefetch = 0 : i64, scratch_operands = 0 : i64, tpu.core_type = #tpu.core_type<tc>, window_params = [{transform_indices = @transform_0, window_bounds = array<i64: 16, 128>}, {transform_indices = @transform_1, window_bounds = array<i64: 16, 128>}, {transform_indices = @transform_2, window_bounds = array<i64: 1, 8, 128>}, {transform_indices = @transform_3, window_bounds = array<i64: 1, 8, 128>}]} {
    %c0_i32 = arith.constant 0 : i32
    %0 = arith.cmpi eq, %arg1, %c0_i32 : i32
    %1 = arith.extui %0 : i1 to i32
    %c0_i32_0 = arith.constant 0 : i32
    %2 = arith.cmpi ne, %1, %c0_i32_0 : i32
    scf.if %2 {
      %cst_17 = arith.constant 0.000000e+00 : f32
      %30 = vector.broadcast %cst_17 : f32 to vector<8x128xf32>
      %c0_18 = arith.constant 0 : index
      %c0_19 = arith.constant 0 : index
      %c0_20 = arith.constant 0 : index
      %31 = vector.load %arg4[%c0_18, %c0_19, %c0_20] : memref<1x8x128xf32, #tpu.memory_space<vmem>>, vector<1x8x128xf32>
      %32 = vector.shape_cast %31 : vector<1x8x128xf32> to vector<8x128xf32>
      %33 = vector.shape_cast %30 : vector<8x128xf32> to vector<1x8x128xf32>
      tpu.vector_store %arg4[%c0_18, %c0_19, %c0_20], %33 {strides = array<i32>} : memref<1x8x128xf32, #tpu.memory_space<vmem>>, vector<1x8x128xf32>,
      %cst_21 = arith.constant 0.000000e+00 : f32
      %34 = vector.broadcast %cst_21 : f32 to vector<8x128xf32>
      %c0_22 = arith.constant 0 : index
      %c0_23 = arith.constant 0 : index
      %c0_24 = arith.constant 0 : index
      %35 = vector.load %arg5[%c0_22, %c0_23, %c0_24] : memref<1x8x128xf32, #tpu.memory_space<vmem>>, vector<1x8x128xf32>
      %36 = vector.shape_cast %35 : vector<1x8x128xf32> to vector<8x128xf32>
      %37 = vector.shape_cast %34 : vector<8x128xf32> to vector<1x8x128xf32>
      tpu.vector_store %arg5[%c0_22, %c0_23, %c0_24], %37 {strides = array<i32>} : memref<1x8x128xf32, #tpu.memory_space<vmem>>, vector<1x8x128xf32>,
    } else {
    }
    %cst = arith.constant 0.000000e+00 : f32
    %3 = vector.broadcast %cst : f32 to vector<8x128xf32>
    %c0_i32_1 = arith.constant 0 : i32
    %c16_i32 = arith.constant 16 : i32
    %4 = arith.muli %c0_i32_1, %c16_i32 : i32
    %5 = tpu.assume_multiple %4, 16 : i32
    %6 = arith.index_cast %5 : i32 to index
    %c0 = arith.constant 0 : index
    %7 = vector.load %arg2[%6, %c0] : memref<16x128xf32, #tpu.memory_space<vmem>>, vector<16x128xf32>
    %8 = arith.index_cast %5 : i32 to index
    %c0_2 = arith.constant 0 : index
    %9 = vector.load %arg3[%8, %c0_2] : memref<16x128xf32, #tpu.memory_space<vmem>>, vector<16x128xf32>
    %10 = arith.mulf %7, %9 : vector<16x128xf32>
    %11 = vector.shape_cast %10 : vector<16x128xf32> to vector<2x8x128xf32>
    %cst_3 = arith.constant dense<0.000000e+00> : vector<8x128xf32>
    %12 = vector.multi_reduction <add>, %11, %cst_3 [0] : vector<2x8x128xf32> to vector<8x128xf32>
    %13 = arith.addf %3, %12 : vector<8x128xf32>
    %14 = arith.addf %7, %9 : vector<16x128xf32>
    %15 = vector.shape_cast %14 : vector<16x128xf32> to vector<2x8x128xf32>
    %cst_4 = arith.constant dense<0.000000e+00> : vector<8x128xf32>
    %16 = vector.multi_reduction <add>, %15, %cst_4 [0] : vector<2x8x128xf32> to vector<8x128xf32>
    %17 = arith.addf %3, %16 : vector<8x128xf32>
    %c1_i32 = arith.constant 1 : i32
    %c0_5 = arith.constant 0 : index
    %c0_6 = arith.constant 0 : index
    %c0_7 = arith.constant 0 : index
    %18 = vector.load %arg4[%c0_5, %c0_6, %c0_7] : memref<1x8x128xf32, #tpu.memory_space<vmem>>, vector<1x8x128xf32>
    %19 = vector.shape_cast %18 : vector<1x8x128xf32> to vector<8x128xf32>
    %20 = arith.addf %19, %13 : vector<8x128xf32>
    %c0_8 = arith.constant 0 : index
    %c0_9 = arith.constant 0 : index
    %c0_10 = arith.constant 0 : index
    %21 = vector.load %arg4[%c0_8, %c0_9, %c0_10] : memref<1x8x128xf32, #tpu.memory_space<vmem>>, vector<1x8x128xf32>
    %22 = vector.shape_cast %21 : vector<1x8x128xf32> to vector<8x128xf32>
    %23 = vector.shape_cast %20 : vector<8x128xf32> to vector<1x8x128xf32>
    tpu.vector_store %arg4[%c0_8, %c0_9, %c0_10], %23 {strides = array<i32>} : memref<1x8x128xf32, #tpu.memory_space<vmem>>, vector<1x8x128xf32>,
    %c0_11 = arith.constant 0 : index
    %c0_12 = arith.constant 0 : index
    %c0_13 = arith.constant 0 : index
    %24 = vector.load %arg5[%c0_11, %c0_12, %c0_13] : memref<1x8x128xf32, #tpu.memory_space<vmem>>, vector<1x8x128xf32>
    %25 = vector.shape_cast %24 : vector<1x8x128xf32> to vector<8x128xf32>
    %26 = arith.addf %25, %17 : vector<8x128xf32>
    %c0_14 = arith.constant 0 : index
    %c0_15 = arith.constant 0 : index
    %c0_16 = arith.constant 0 : index
    %27 = vector.load %arg5[%c0_14, %c0_15, %c0_16] : memref<1x8x128xf32, #tpu.memory_space<vmem>>, vector<1x8x128xf32>
    %28 = vector.shape_cast %27 : vector<1x8x128xf32> to vector<8x128xf32>
    %29 = vector.shape_cast %26 : vector<8x128xf32> to vector<1x8x128xf32>
    tpu.vector_store %arg5[%c0_14, %c0_15, %c0_16], %29 {strides = array<i32>} : memref<1x8x128xf32, #tpu.memory_space<vmem>>, vector<1x8x128xf32>,
    return
  }
  func.func @transform_0(%arg0: i32, %arg1: i32) -> (i32, i32) {
    %c1_i32 = arith.constant 1 : i32
    %0 = arith.muli %arg0, %c1_i32 : i32
    %1 = arith.addi %0, %arg1 : i32
    %c0_i32 = arith.constant 0 : i32
    %c0_i32_0 = arith.constant 0 : i32
    return %1, %c0_i32 : i32, i32
  }
  func.func @transform_1(%arg0: i32, %arg1: i32) -> (i32, i32) {
    %c1_i32 = arith.constant 1 : i32
    %0 = arith.muli %arg0, %c1_i32 : i32
    %1 = arith.addi %0, %arg1 : i32
    %c0_i32 = arith.constant 0 : i32
    %c0_i32_0 = arith.constant 0 : i32
    return %1, %c0_i32 : i32, i32
  }
  func.func @transform_2(%arg0: i32, %arg1: i32) -> (i32, i32, i32) {
    %c0_i32 = arith.constant 0 : i32
    %c0_i32_0 = arith.constant 0 : i32
    %c0_i32_1 = arith.constant 0 : i32
    return %arg0, %c0_i32, %c0_i32_0 : i32, i32, i32
  }
  func.func @transform_3(%arg0: i32, %arg1: i32) -> (i32, i32, i32) {
    %c0_i32 = arith.constant 0 : i32
    %c0_i32_0 = arith.constant 0 : i32
    %c0_i32_1 = arith.constant 0 : i32
    return %arg0, %c0_i32, %c0_i32_0 : i32, i32, i32
  }
}

</mosaic_0001>

<bundles_post_ra>
// kernel: tpu_custom_call.1
= control target key start
LH: loop header
LB: loop body
LE: loop exit
PB: predicated region body
PF: predicated region fallthrough
CT: control target
= control target key end

     0   :  { %9 = vsyncpa [#allocation3], 0  ;;  %s286_s0 = inlined_call_operand.hbm [shape: f32[16,128], index: 0, kind: input, shape index: {}]   ;;  %s287_s1 = inlined_call_operand.hbm [shape: f32[16,128], index: 1, kind: input, shape index: {}]   ;;  %s288_s2 = inlined_call_operand.hbm [shape: f32[1,8,128], index: 2, kind: output, shape index: {0}]   ;;  %s289_s3 = inlined_call_operand.hbm [shape: f32[1,8,128], index: 3, kind: output, shape index: {1}]  }
   0x1   :  { %10 = vsyncpa [#allocation6], 0 }
   0x2   :  { %11 = vsyncpa [#allocation4], 0 }
   0x3   :  { %12 = vsyncpa [#allocation9], 0  ;;  %s212_s12 = smov [#allocation2]   ;;  %s116_s16 = scalar_lea.hbm %s286_s0, 256 }
   0x4   :  { %s22_s13 = sshll.u32 %s212_s12, 4  ;;  %p117_p0 = scmp.ne.s32.totalorder %s286_s0, %s116_s16  ;;  %s23_s13 = int_to_ptr.vmem [resolvable:$true] %s22_s13 }
   0x5   :  { %p120_p1 = scmp.lt.u32.totalorder %s116_s16, %s286_s0 }
   0x7   :  { %p122_p2 = pnand %p120_p1, %p117_p0 }
   0x9   :  { %125 = shalt.err (!%p122_p2)
}
   0xa   :  { %s126_s21 = scalar_lea.vmem %s23_s13, 256  ;;  %p131_p4 = scmp.lt.s32.totalorder %s23_s13, %s23_s13 }
   0xb   :  { %p127_p3 = scmp.ne.s32.totalorder %s23_s13, %s126_s21  ;;  %p132_p5 = scmp.lt.s32.totalorder %s126_s21, %s126_s21 }
   0xd   :  { %p133_p6 = por %p132_p5, %p131_p4 }
   0xf   :  { %p134_p7 = pnand %p133_p6, %p127_p3 }
  0x11   :  { %137 = shalt.err (!%p134_p7)
}
  0x12   :  { %s213_s22 = smov 128   ;;  %s214_s23 = smov 8  }
  0x13   :  { %28 = dma.hbm_to_vmem [thread:$0]  %s286_s0, 256, %s23_s13, [#allocation3], %s213_s22, %s213_s22, %s214_s23  }
  0x14   :  { %s215_s26 = smov [#allocation5]   ;;  %s138_s30 = scalar_lea.hbm %s287_s1, 256 }
  0x15   :  { %s38_s27 = sshll.u32 %s215_s26, 4  ;;  %p139_p8 = scmp.ne.s32.totalorder %s287_s1, %s138_s30  ;;  %s39_s27 = int_to_ptr.vmem [resolvable:$true] %s38_s27 }
  0x16   :  { %p142_p9 = scmp.lt.u32.totalorder %s138_s30, %s287_s1 }
  0x18   :  { %p144_p10 = pnand %p142_p9, %p139_p8 }
  0x1a   :  { %147 = shalt.err (!%p144_p10)
}
  0x1b   :  { %s148_s8 = scalar_lea.vmem %s39_s27, 256  ;;  %p153_p12 = scmp.lt.s32.totalorder %s39_s27, %s39_s27 }
  0x1c   :  { %p149_p11 = scmp.ne.s32.totalorder %s39_s27, %s148_s8  ;;  %p154_p13 = scmp.lt.s32.totalorder %s148_s8, %s148_s8 }
  0x1e   :  { %p155_p0 = por %p154_p13, %p153_p12 }
  0x20   :  { %p156_p1 = pnand %p155_p0, %p149_p11 }
  0x22   :  { %159 = shalt.err (!%p156_p1)
}
  0x23   :  { %44 = dma.hbm_to_vmem [thread:$0]  %s287_s1, 256, %s39_s27, [#allocation6], %s213_s22, %s213_s22, %s214_s23  }
  0x24   :  { %204 = dma.done.wait [#allocation3], 256  }
  0x25   :  { %205 = vsyncadd [#allocation3], 4294967040 }
  0x26   :  { %206 = dma.done.wait [#allocation6], 256  }
  0x27   :  { %207 = vsyncadd [#allocation6], 4294967040  ;;  %v61_v0 = vld [vmem:[#allocation2] sm:$0xff]  ;;  %v62_v1 = vld [vmem:[#allocation2 + $0x8] sm:$0xff]  ;;  %s216_s10 = smov [#allocation7]   ;;  %s217_s12 = smov [#allocation8]  }
  0x28   :  { %v63_v2 = vld [vmem:[#allocation5] sm:$0xff]  ;;  %v64_v3 = vld [vmem:[#allocation5 + $0x8] sm:$0xff]  ;;  %s85_s11 = sshll.u32 %s216_s10, 4  ;;  %s95_s13 = sshll.u32 %s217_s12, 4  ;;  %s86_s11 = int_to_ptr.vmem [resolvable:$true] %s85_s11  ;;  %s96_s13 = int_to_ptr.vmem [resolvable:$true] %s95_s13 }
  0x29   :  { %v65_v4 = vmul.f32 %v63_v2, %v61_v0  ;;  %v69_v5 = vadd.f32 %v63_v2, %v61_v0  ;;  %v66_v6 = vmul.f32 %v64_v3, %v62_v1  ;;  %v70_v7 = vadd.f32 %v64_v3, %v62_v1  ;;  %s160_s1 = scalar_lea.vmem %s86_s11, 128  ;;  %p165_p3 = scmp.lt.s32.totalorder %s86_s11, %s86_s11 }
  0x2a   :  { %p161_p2 = scmp.ne.s32.totalorder %s86_s11, %s160_s1  ;;  %p166_p4 = scmp.lt.s32.totalorder %s160_s1, %s160_s1 }
  0x2b   :  { %v67_v8 = vadd.f32 %v66_v6, %v65_v4  ;;  %v71_v9 = vadd.f32 %v70_v7, %v69_v5 }
  0x2c   :  { %p167_p5 = por %p166_p4, %p165_p3 }
  0x2d   :  { %75 = vst [vmem:[#allocation7] sm:$0xff] %v67_v8  ;;  %78 = vst [vmem:[#allocation8] sm:$0xff] %v71_v9 }
  0x2e   :  { %p168_p6 = pnand %p167_p5, %p161_p2 }
  0x30   :  { %171 = shalt.err (!%p168_p6)
}
  0x31   :  { %s172_s16 = scalar_lea.hbm %s288_s2, 128 }
  0x32   :  { %p173_p7 = scmp.ne.s32.totalorder %s288_s2, %s172_s16  ;;  %p176_p8 = scmp.lt.u32.totalorder %s172_s16, %s288_s2 }
  0x34   :  { %p178_p9 = pnand %p176_p8, %p173_p7 }
  0x36   :  { %181 = shalt.err (!%p178_p9)
}
  0x37   :  { %88 = dma.vmem_to_hbm [thread:$0]  %s86_s11, 128, %s288_s2, [#allocation4]  }
  0x38   :  { %s182_s23 = scalar_lea.vmem %s96_s13, 128  ;;  %p187_p11 = scmp.lt.s32.totalorder %s96_s13, %s96_s13 }
  0x39   :  { %p183_p10 = scmp.ne.s32.totalorder %s96_s13, %s182_s23  ;;  %p188_p12 = scmp.lt.s32.totalorder %s182_s23, %s182_s23 }
  0x3b   :  { %p189_p13 = por %p188_p12, %p187_p11 }
  0x3d   :  { %p190_p0 = pnand %p189_p13, %p183_p10 }
  0x3f   :  { %193 = shalt.err (!%p190_p0)
}
  0x40   :  { %s194_s26 = scalar_lea.hbm %s289_s3, 128 }
  0x41   :  { %p195_p1 = scmp.ne.s32.totalorder %s289_s3, %s194_s26  ;;  %p198_p2 = scmp.lt.u32.totalorder %s194_s26, %s289_s3 }
  0x43   :  { %p200_p3 = pnand %p198_p2, %p195_p1 }
  0x45   :  { %203 = shalt.err (!%p200_p3)
}
  0x46   :  { %98 = dma.vmem_to_hbm [thread:$0]  %s96_s13, 128, %s289_s3, [#allocation9]  }
  0x47   :  { %208 = dma.done.wait [#allocation4], 128  }
  0x48   :  { %209 = vsyncadd [#allocation4], 4294967168 }
  0x49   :  { %210 = dma.done.wait [#allocation9], 128  }
  0x4a   :  { %211 = vsyncadd [#allocation9], 4294967168 }
  0x4b   :  { %105 = vsyncpa [#allocation3], 1 }
  0x4c   :  { %106 = vsyncpa [#allocation6], 1 }
  0x4d   :  { %107 = vsyncpa [#allocation4], 1 }
  0x4e   :  { %108 = vsyncpa [#allocation9], 1 }

</bundles_post_ra>
